<compile_context>
chip_gen: v6e
topology: v6e:2x2x1
jax: 0.10.0
libtpu: 0.0.40
codegen_flags: <defaults>
</compile_context>

<pallas_src>
import jax
import jax.numpy as jnp
from jax.experimental import pallas as pl
from jax.experimental.pallas import tpu as pltpu


def _round_up(n: int, m: int) -> int:
    return ((n + m - 1) // m) * m


def _make_proj_logsoftmax_kernel(nj: int):
    """Build the kernel with the number of V panels (nj) baked in as a Python constant."""

    def kernel(x_ref, w_ref, b_ref, o_ref, logits_sc, m_sc, s_sc):
        # x_ref: (TM, D) bf16/f32   w_ref: (D, TV)   b_ref: (1, TV) f32
        # o_ref: (TM, V_pad)        logits_sc: (nj, TM, TV) f32
        # m_sc, s_sc: (TM, 1) f32 running max / running sum-exp
        j = pl.program_id(1)
        tv = w_ref.shape[-1]  # static

        @pl.when(j == 0)
        def _init():
            m_sc[...] = jnp.full_like(m_sc, -jnp.inf)
            s_sc[...] = jnp.zeros_like(s_sc)

        # MXU matmul: bf16 operands, f32 accumulate. Bias add in f32.
        panel = jnp.dot(x_ref[...], w_ref[...], preferred_element_type=jnp.float32)
        panel = panel + b_ref[...].astype(jnp.float32)

        # Stash the logit panel (f32) for the final normalization pass.
        logits_sc[j] = panel

        # Online max / sum-exp update (all f32, keepdims lane-axis reductions).
        m_prev = m_sc[...]
        m_new = jnp.maximum(m_prev, jnp.max(panel, axis=-1, keepdims=True))
        s_sc[...] = s_sc[...] * jnp.exp(m_prev - m_new) + jnp.sum(
            jnp.exp(panel - m_new), axis=-1, keepdims=True
        )
        m_sc[...] = m_new

        @pl.when(j == nj - 1)
        def _finalize():
            lse = m_sc[...] + jnp.log(s_sc[...])  # once per row tile
            for jj in range(nj):  # static unrolled panel writeback
                o_ref[:, jj * tv:(jj + 1) * tv] = (logits_sc[jj] - lse).astype(o_ref.dtype)

    return kernel


def projection_layer(
    x,
    weight,
    bias,
    *,
    tile_m: int = 256,
    tile_v: int = 512,
    compute_dtype=jnp.bfloat16,
    out_dtype=None,
    vmem_limit_bytes: int = 64 * 1024 * 1024,
):
    """x: (B, S, D); weight: (D, V); bias: (V,). Returns (B, S, V) log-probabilities."""
    B, S, D = x.shape
    Dw, V = weight.shape
    assert D == Dw, "weight must be (d_model, vocab_size)"
    out_dtype = x.dtype if out_dtype is None else out_dtype

    M = B * S
    # Clamp tiles so tiny problems don't over-pad, but keep (8, 128) alignment.
    tm = min(tile_m, _round_up(M, 8))
    tv = min(tile_v, _round_up(V, 128))
    M_pad = _round_up(M, tm)
    V_pad = _round_up(V, tv)
    nj = V_pad // tv

    x2 = x.reshape(M, D).astype(compute_dtype)
    if M_pad != M:
        x2 = jnp.pad(x2, ((0, M_pad - M), (0, 0)))

    w = weight.astype(compute_dtype)
    b2 = bias.astype(jnp.float32).reshape(1, V)
    if V_pad != V:
        w = jnp.pad(w, ((0, 0), (0, V_pad - V)))
        # Huge negative bias on padded vocab columns -> they never affect max / sum-exp.
        b2 = jnp.pad(b2, ((0, 0), (0, V_pad - V)), constant_values=-1e30)

    out = pl.pallas_call(
        _make_proj_logsoftmax_kernel(nj),
        out_shape=jax.ShapeDtypeStruct((M_pad, V_pad), out_dtype),
        grid_spec=pltpu.PrefetchScalarGridSpec(
            num_scalar_prefetch=0,
            grid=(M_pad // tm, nj),  # M rows outer ("parallel"), V panels inner ("arbitrary")
            in_specs=[
                pl.BlockSpec((tm, D), lambda i, j: (i, 0)),   # row tile of activations
                pl.BlockSpec((D, tv), lambda i, j: (0, j)),   # streamed weight column panel
                pl.BlockSpec((1, tv), lambda i, j: (0, j)),   # bias panel
            ],
            # Output block index is independent of j -> resident accumulator across V panels,
            # written once on the last panel (lane-dense: V_pad is a multiple of 128).
            out_specs=pl.BlockSpec((tm, V_pad), lambda i, j: (i, 0)),
            scratch_shapes=[
                pltpu.VMEM((nj, tm, tv), jnp.float32),  # stashed logit panels
                pltpu.VMEM((tm, 1), jnp.float32),       # running max
                pltpu.VMEM((tm, 1), jnp.float32),       # running sum-exp
            ],
        ),
        compiler_params=pltpu.CompilerParams(
            dimension_semantics=("parallel", "arbitrary"),
            vmem_limit_bytes=vmem_limit_bytes,
        ),
    )(x2, w, b2)

    return out[:M, :V].reshape(B, S, V)


def _reference(x, weight, bias):
    # Reference matching the kernel's bf16-operand matmul (f32 accumulate + f32 softmax).
    xb = x.astype(jnp.bfloat16).astype(jnp.float32)
    wb = weight.astype(jnp.bfloat16).astype(jnp.float32)
    B, S, D = x.shape
    logits = xb.reshape(B * S, D) @ wb + bias
    return jax.nn.log_softmax(logits, axis=-1).reshape(B, S, -1)


if __name__ == "__main__":
    key = jax.random.PRNGKey(0)
    kx, kw, kb, kx2 = jax.random.split(key, 4)

    # Small shapes consistent with a decoder head: (batch, seq, d_model) -> (batch, seq, vocab).
    B, S, D, V = 2, 8, 64, 2048

    # Deterministic init mirroring nn.Linear's default: U(-1/sqrt(D), 1/sqrt(D)).
    bound = 1.0 / (D ** 0.5)
    weight = jax.random.uniform(kw, (D, V), jnp.float32, minval=-bound, maxval=bound)
    bias = jax.random.uniform(kb, (V,), jnp.float32, minval=-bound, maxval=bound)
    x = jax.random.normal(kx, (B, S, D), jnp.float32)

    # Test 1: default tiles (exercises the multi-panel online log-softmax: nj = 4).
    out = projection_layer(x, weight, bias)
    jax.block_until_ready(out)
    ref = _reference(x, weight, bias)
    assert out.shape == (B, S, V)
    assert jnp.allclose(out, ref, atol=1e-4, rtol=1e-4), "mismatch vs reference (test 1)"

    # Test 2: ragged M and V that require row/column padding.
    B2, S2, V2 = 2, 5, 1000
    x_r = jax.random.normal(kx2, (B2, S2, D), jnp.float32)
    w_r = weight[:, :V2]
    b_r = bias[:V2]
    out2 = projection_layer(x_r, w_r, b_r, tile_m=128, tile_v=256)
    jax.block_until_ready(out2)
    ref2 = _reference(x_r, w_r, b_r)
    assert out2.shape == (B2, S2, V2)
    assert jnp.allclose(out2, ref2, atol=1e-4, rtol=1e-4), "mismatch vs reference (test 2)"

    print("KERNEL_OK")
</pallas_src>

<mosaic_0001>
module attributes {stable_mosaic.version = 11 : i64} {
  func.func @kernel(%arg0: i32, %arg1: i32, %arg2: memref<16x64xbf16, #tpu.memory_space<vmem>>, %arg3: memref<64x512xbf16, #tpu.memory_space<vmem>>, %arg4: memref<1x512xf32, #tpu.memory_space<vmem>>, %arg5: memref<16x2048xf32, #tpu.memory_space<vmem>>, %arg6: memref<4x16x512xf32, #tpu.memory_space<vmem>>, %arg7: memref<16x1xf32, #tpu.memory_space<vmem>>, %arg8: memref<16x1xf32, #tpu.memory_space<vmem>>) attributes {dimension_semantics = [#tpu.dimension_semantics<parallel>, #tpu.dimension_semantics<arbitrary>], iteration_bounds = array<i64: 1, 4>, scalar_prefetch = 0 : i64, scratch_operands = 3 : i64, tpu.core_type = #tpu.core_type<tc>, window_params = [{transform_indices = @transform_0, window_bounds = array<i64: 16, 64>}, {transform_indices = @transform_1, window_bounds = array<i64: 64, 512>}, {transform_indices = @transform_2, window_bounds = array<i64: 1, 512>}, {transform_indices = @transform_3, window_bounds = array<i64: 16, 2048>}]} {
    %c0_i32 = arith.constant 0 : i32
    %0 = arith.cmpi eq, %arg1, %c0_i32 : i32
    %1 = arith.extui %0 : i1 to i32
    %c0_i32_0 = arith.constant 0 : i32
    %2 = arith.cmpi ne, %1, %c0_i32_0 : i32
    scf.if %2 {
      %cst_19 = arith.constant 0xFF800000 : f32
      %32 = vector.broadcast %cst_19 : f32 to vector<16x1xf32>
      %c0_20 = arith.constant 0 : index
      %c0_21 = arith.constant 0 : index
      %33 = vector.load %arg7[%c0_20, %c0_21] : memref<16x1xf32, #tpu.memory_space<vmem>>, vector<16x1xf32>
      tpu.vector_store %arg7[%c0_20, %c0_21], %32 {strides = array<i32>} : memref<16x1xf32, #tpu.memory_space<vmem>>, vector<16x1xf32>,
      %cst_22 = arith.constant 0.000000e+00 : f32
      %34 = vector.broadcast %cst_22 : f32 to vector<16x1xf32>
      %c0_23 = arith.constant 0 : index
      %c0_24 = arith.constant 0 : index
      %35 = vector.load %arg8[%c0_23, %c0_24] : memref<16x1xf32, #tpu.memory_space<vmem>>, vector<16x1xf32>
      tpu.vector_store %arg8[%c0_23, %c0_24], %34 {strides = array<i32>} : memref<16x1xf32, #tpu.memory_space<vmem>>, vector<16x1xf32>,
    } else {
    }
    %c0 = arith.constant 0 : index
    %c0_1 = arith.constant 0 : index
    %3 = vector.load %arg2[%c0, %c0_1] : memref<16x64xbf16, #tpu.memory_space<vmem>>, vector<16x64xbf16>
    %c0_2 = arith.constant 0 : index
    %c0_3 = arith.constant 0 : index
    %4 = vector.load %arg3[%c0_2, %c0_3] : memref<64x512xbf16, #tpu.memory_space<vmem>>, vector<64x512xbf16>
    %cst = arith.constant dense<0.000000e+00> : vector<16x512xf32>
    %5 = tpu.matmul %3, %4, %cst {dimension_numbers = #tpu.dot_dimension_numbers<[1], [0], [0], [1], [0, 0, 1, 1], [], []>} : vector<16x64xbf16>, vector<64x512xbf16>, vector<16x512xf32> -> vector<16x512xf32>
    %c0_4 = arith.constant 0 : index
    %c0_5 = arith.constant 0 : index
    %6 = vector.load %arg4[%c0_4, %c0_5] : memref<1x512xf32, #tpu.memory_space<vmem>>, vector<1x512xf32>
    %7 = vector.broadcast %6 : vector<1x512xf32> to vector<16x512xf32>
    %8 = arith.addf %5, %7 : vector<16x512xf32>
    %9 = arith.index_cast %arg1 : i32 to index
    %c0_6 = arith.constant 0 : index
    %c0_7 = arith.constant 0 : index
    %10 = vector.load %arg6[%9, %c0_6, %c0_7] : memref<4x16x512xf32, #tpu.memory_space<vmem>>, vector<1x16x512xf32>
    %11 = vector.shape_cast %10 : vector<1x16x512xf32> to vector<16x512xf32>
    %12 = vector.shape_cast %8 : vector<16x512xf32> to vector<1x16x512xf32>
    tpu.vector_store %arg6[%9, %c0_6, %c0_7], %12 {strides = array<i32>} : memref<4x16x512xf32, #tpu.memory_space<vmem>>, vector<1x16x512xf32>,
    %c0_8 = arith.constant 0 : index
    %c0_9 = arith.constant 0 : index
    %13 = vector.load %arg7[%c0_8, %c0_9] : memref<16x1xf32, #tpu.memory_space<vmem>>, vector<16x1xf32>
    %cst_10 = arith.constant dense<0xFF800000> : vector<16xf32>
    %14 = vector.multi_reduction <maximumf>, %8, %cst_10 [1] : vector<16x512xf32> to vector<16xf32>
    %15 = vector.shape_cast %14 : vector<16xf32> to vector<16x1xf32>
    %16 = arith.maximumf %13, %15 : vector<16x1xf32>
    %c0_11 = arith.constant 0 : index
    %c0_12 = arith.constant 0 : index
    %17 = vector.load %arg8[%c0_11, %c0_12] : memref<16x1xf32, #tpu.memory_space<vmem>>, vector<16x1xf32>
    %18 = arith.subf %13, %16 : vector<16x1xf32>
    %19 = math.exp %18 : vector<16x1xf32>
    %20 = arith.mulf %17, %19 : vector<16x1xf32>
    %21 = vector.broadcast %16 : vector<16x1xf32> to vector<16x512xf32>
    %22 = arith.subf %8, %21 : vector<16x512xf32>
    %23 = math.exp %22 : vector<16x512xf32>
    %cst_13 = arith.constant dense<0.000000e+00> : vector<16xf32>
    %24 = vector.multi_reduction <add>, %23, %cst_13 [1] : vector<16x512xf32> to vector<16xf32>
    %25 = vector.shape_cast %24 : vector<16xf32> to vector<16x1xf32>
    %26 = arith.addf %20, %25 : vector<16x1xf32>
    %c0_14 = arith.constant 0 : index
    %c0_15 = arith.constant 0 : index
    %27 = vector.load %arg8[%c0_14, %c0_15] : memref<16x1xf32, #tpu.memory_space<vmem>>, vector<16x1xf32>
    tpu.vector_store %arg8[%c0_14, %c0_15], %26 {strides = array<i32>} : memref<16x1xf32, #tpu.memory_space<vmem>>, vector<16x1xf32>,
    %c0_16 = arith.constant 0 : index
    %c0_17 = arith.constant 0 : index
    %28 = vector.load %arg7[%c0_16, %c0_17] : memref<16x1xf32, #tpu.memory_space<vmem>>, vector<16x1xf32>
    tpu.vector_store %arg7[%c0_16, %c0_17], %16 {strides = array<i32>} : memref<16x1xf32, #tpu.memory_space<vmem>>, vector<16x1xf32>,
    %c3_i32 = arith.constant 3 : i32
    %29 = arith.cmpi eq, %arg1, %c3_i32 : i32
    %30 = arith.extui %29 : i1 to i32
    %c0_i32_18 = arith.constant 0 : i32
    %31 = arith.cmpi ne, %30, %c0_i32_18 : i32
    scf.if %31 {
      %c0_19 = arith.constant 0 : index
      %c0_20 = arith.constant 0 : index
      %32 = vector.load %arg7[%c0_19, %c0_20] : memref<16x1xf32, #tpu.memory_space<vmem>>, vector<16x1xf32>
      %c0_21 = arith.constant 0 : index
      %c0_22 = arith.constant 0 : index
      %33 = vector.load %arg8[%c0_21, %c0_22] : memref<16x1xf32, #tpu.memory_space<vmem>>, vector<16x1xf32>
      %34 = math.log %33 : vector<16x1xf32>
      %35 = arith.addf %32, %34 : vector<16x1xf32>
      %c0_23 = arith.constant 0 : index
      %c0_24 = arith.constant 0 : index
      %c0_25 = arith.constant 0 : index
      %36 = vector.load %arg6[%c0_23, %c0_24, %c0_25] : memref<4x16x512xf32, #tpu.memory_space<vmem>>, vector<1x16x512xf32>
      %37 = vector.shape_cast %36 : vector<1x16x512xf32> to vector<16x512xf32>
      %38 = vector.broadcast %35 : vector<16x1xf32> to vector<16x512xf32>
      %39 = arith.subf %37, %38 : vector<16x512xf32>
      %c0_26 = arith.constant 0 : index
      %c0_27 = arith.constant 0 : index
      %40 = vector.load %arg5[%c0_26, %c0_27] : memref<16x2048xf32, #tpu.memory_space<vmem>>, vector<16x512xf32>
      tpu.vector_store %arg5[%c0_26, %c0_27], %39 {strides = array<i32>} : memref<16x2048xf32, #tpu.memory_space<vmem>>, vector<16x512xf32>,
      %c1 = arith.constant 1 : index
      %c0_28 = arith.constant 0 : index
      %c0_29 = arith.constant 0 : index
      %41 = vector.load %arg6[%c1, %c0_28, %c0_29] : memref<4x16x512xf32, #tpu.memory_space<vmem>>, vector<1x16x512xf32>
      %42 = vector.shape_cast %41 : vector<1x16x512xf32> to vector<16x512xf32>
      %43 = vector.broadcast %35 : vector<16x1xf32> to vector<16x512xf32>
      %44 = arith.subf %42, %43 : vector<16x512xf32>
      %c0_30 = arith.constant 0 : index
      %c512 = arith.constant 512 : index
      %45 = vector.load %arg5[%c0_30, %c512] : memref<16x2048xf32, #tpu.memory_space<vmem>>, vector<16x512xf32>
      tpu.vector_store %arg5[%c0_30, %c512], %44 {strides = array<i32>} : memref<16x2048xf32, #tpu.memory_space<vmem>>, vector<16x512xf32>,
      %c2 = arith.constant 2 : index
      %c0_31 = arith.constant 0 : index
      %c0_32 = arith.constant 0 : index
      %46 = vector.load %arg6[%c2, %c0_31, %c0_32] : memref<4x16x512xf32, #tpu.memory_space<vmem>>, vector<1x16x512xf32>
      %47 = vector.shape_cast %46 : vector<1x16x512xf32> to vector<16x512xf32>
      %48 = vector.broadcast %35 : vector<16x1xf32> to vector<16x512xf32>
      %49 = arith.subf %47, %48 : vector<16x512xf32>
      %c0_33 = arith.constant 0 : index
      %c1024 = arith.constant 1024 : index
      %50 = vector.load %arg5[%c0_33, %c1024] : memref<16x2048xf32, #tpu.memory_space<vmem>>, vector<16x512xf32>
      tpu.vector_store %arg5[%c0_33, %c1024], %49 {strides = array<i32>} : memref<16x2048xf32, #tpu.memory_space<vmem>>, vector<16x512xf32>,
      %c3 = arith.constant 3 : index
      %c0_34 = arith.constant 0 : index
      %c0_35 = arith.constant 0 : index
      %51 = vector.load %arg6[%c3, %c0_34, %c0_35] : memref<4x16x512xf32, #tpu.memory_space<vmem>>, vector<1x16x512xf32>
      %52 = vector.shape_cast %51 : vector<1x16x512xf32> to vector<16x512xf32>
      %53 = vector.broadcast %35 : vector<16x1xf32> to vector<16x512xf32>
      %54 = arith.subf %52, %53 : vector<16x512xf32>
      %c0_36 = arith.constant 0 : index
      %c1536 = arith.constant 1536 : index
      %55 = vector.load %arg5[%c0_36, %c1536] : memref<16x2048xf32, #tpu.memory_space<vmem>>, vector<16x512xf32>
      tpu.vector_store %arg5[%c0_36, %c1536], %54 {strides = array<i32>} : memref<16x2048xf32, #tpu.memory_space<vmem>>, vector<16x512xf32>,
    } else {
    }
    return
  }
  func.func @transform_0(%arg0: i32, %arg1: i32) -> (i32, i32) {
    %c0_i32 = arith.constant 0 : i32
    %c0_i32_0 = arith.constant 0 : i32
    return %arg0, %c0_i32 : i32, i32
  }
  func.func @transform_1(%arg0: i32, %arg1: i32) -> (i32, i32) {
    %c0_i32 = arith.constant 0 : i32
    %c0_i32_0 = arith.constant 0 : i32
    return %c0_i32, %arg1 : i32, i32
  }
  func.func @transform_2(%arg0: i32, %arg1: i32) -> (i32, i32) {
    %c0_i32 = arith.constant 0 : i32
    %c0_i32_0 = arith.constant 0 : i32
    return %c0_i32, %arg1 : i32, i32
  }
  func.func @transform_3(%arg0: i32, %arg1: i32) -> (i32, i32) {
    %c0_i32 = arith.constant 0 : i32
    %c0_i32_0 = arith.constant 0 : i32
    return %arg0, %c0_i32 : i32, i32
  }
}

</mosaic_0001>

<bundles_post_ra>
// kernel: tpu_custom_call.1
= control target key start
LH: loop header
LB: loop body
LE: loop exit
PB: predicated region body
PF: predicated region fallthrough
CT: control target
= control target key end

     0   :  { %8 = vsyncpa [#allocation6], 0  ;;  %s1371_s0 = inlined_call_operand.hbm [shape: bf16[16,64], index: 0, kind: input, shape index: {}]   ;;  %s1372_s1 = inlined_call_operand.hbm [shape: bf16[64,2048], index: 1, kind: input, shape index: {}]   ;;  %s1373_s2 = inlined_call_operand.hbm [shape: f32[1,2048], index: 2, kind: input, shape index: {}]   ;;  %s1374_s3 = inlined_call_operand.hbm [shape: f32[16,2048], index: 3, kind: output, shape index: {}]  }
   0x1   :  { %9 = vsyncpa [#allocation9], 0 }
   0x2   :  { %11 = vsyncpa [#allocation9 + $0x1], 0 }
   0x3   :  { %12 = vsyncpa [#allocation7], 0  ;;  %s1186_s12 = smov 0   ;;  %s1188_s13 = smov 0  }
   0x4   :  { %s1190_s14 = smov 0   ;;  %s1192_s15 = smov 0  }
   0x5   :  { %s1194_s16 = smov 0   ;;  %s1196_s17 = smov 0  }
   0x6 LB: > { %s27_s18 = sadd.s32 1, %s1145_s16  ;;  %s63_s19 = sadd.s32 1, %s1137_s14  ;;  %s1149_s17 = sphi %s1196_s17, %s18_s17   ;;  %s1145_s16 = sphi %s1194_s16, %s1386_s16   ;;  %s1141_s15 = sphi %s1192_s15, %s1385_s15   ;;  %s1137_s14 = sphi %s1190_s14, %s1384_s14   ;;  %s1133_s13 = sphi %s1188_s13, %s1383_s13   ;;  %s1129_s12 = sphi %s1186_s12, %s1382_s12  }
   0x7   : > { %p28_p0 = scmp.ge.s32.totalorder %s27_s18, 4  ;;  %p70_p1 = scmp.ne.s32.totalorder %s1137_s14, %s1133_s13 }
   0x8   : > { %p71_p2 = scmp.eq.s32.totalorder %s1149_s17, 0  ;;  %p868_p4 = scmp.lt.s32.totalorder %s1149_s17, 4 }
   0x9   : > { %s1388_s18 = smov (%p28_p0, %s27_s18), 0  ;;  %s168_s21 = sand.u32 1, %s1149_s17  }
   0xa   : > { %p72_p3 = por %p71_p2, %p70_p1  ;;  %s60_s20 = ssub.s32 %s1145_s16, %s1388_s18 }
   0xb   : > { %p61_p5 = scmp.eq.s32.totalorder %s60_s20, 0  ;;  %s170_s22 = sand.u32 1, %s1137_s14  }
   0xc   : > { %s841_s23 = sshll.u32 %s1145_s16, 8  ;;  %s804_s25 = sshll.u32 %s170_s22, 7 }
   0xd   : > { %s1230_s24 = scalar_select %p61_p5, %s1137_s14, %s63_s19  }
   0xe   : > { %s178_s28 = scalar_lea.hbm %s1372_s1, %s841_s23  ;;  %p1237_p6 = pnand %p868_p4, %p72_p3 }
   0xf   : > { %s172_s30 = scalar_lea.vmem [#allocation8], %s804_s25  ;;  %s1241_s5 = scalar_lea.sflag [#allocation9], %s168_s21 }
  0x10   : > { %s179_s4 = sshll.u32 %s172_s30, 4  ;;  %p987_p7 = pneg %p1237_p6  ;;  %s180_s4 = int_to_ptr.vmem [resolvable:$true] %s179_s4 }
  0x11   : > { %s998_s6 = scalar_lea.vmem %s180_s4, 2048  ;;  %s1151_s7 = smov [#allocation8]  }
  0x12   : > { %p999_p8 = scmp.ne.s32.totalorder %s180_s4, %s998_s6  ;;  %s1003_s8 = sshll.u32 %s1151_s7, 4  ;;  %s1004_s8 = int_to_ptr.vmem [resolvable:$false] %s1003_s8 }
  0x13   : > { %s1005_s9 = scalar_lea.vmem %s1004_s8, 4096  ;;  %p1006_p11 = scmp.lt.s32.totalorder %s180_s4, %s1004_s8 }
  0x14   : > { %p1001_p9 = pnand %p999_p8, %p987_p7  ;;  %p1007_p12 = scmp.lt.s32.totalorder %s1005_s9, %s998_s6 }
  0x16   : > { %p1002_p10 = pneg %p1001_p9  ;;  %p1008_p13 = por %p1007_p12, %p1006_p11 }
  0x18   : > { %p1009_p0 = pnand %p1008_p13, %p1002_p10 }
  0x1a   : > { %1012 = shalt.err (!%p1009_p0)
}
  0x1b   : > { %s1152_s10 = smov 1024   ;;  %s1153_s11 = smov 256  }
  0x1c   : > { %s1154_s19 = smov 16   ;;  %s1252_s20 = sadd.s32 4294967295, %s1149_s17  }
  0x1d   : > { %863 = dma.hbm_to_vmem [thread:$0]  (!%p1237_p6), %s178_s28, 2048, %s180_s4, %s1241_s5, %s1152_s10, %s1153_s11, %s1154_s19  }
  0x1e   : > { %p76_p1 = scmp.ne.s32.totalorder %s1133_s13, %s1129_s12  ;;  %p1375_p2 = scmp.eq.s32.totalorder %s1252_s20, 0 }
  0x1f   : > { %p801_p3 = scmp.ge.s32.totalorder %s1149_s17, 1  ;;  %p139_p4 = scmp.lt.s32.totalorder %s1149_s17, 5 }
  0x20   : > { %p1261_p5 = por %p1375_p2, %p76_p1  ;;  %s1155_s25 = smov [#allocation5]  }
  0x21   : > { %p1265_p8 = pnand %p801_p3, %p139_p4  ;;  %s154_s26 = sshll.u32 %s1155_s25, 4  ;;  %s155_s26 = int_to_ptr.vmem [resolvable:$true] %s154_s26 }
  0x22   : > { %s807_s12 = sshll.u32 %s170_s22, 2  ;;  %s842_s27 = sshll.u32 %s1145_s16, 6 }
  0x23   : > { %p856_p9 = pneg %p1265_p8  ;;  %s1283_s6 = scalar_lea.hbm %s1373_s2, %s842_s27 }
  0x24   : > { %s193_s7 = scalar_lea.vmem [#allocation10], %s807_s12  ;;  %s1024_s9 = scalar_lea.vmem %s155_s26, 128 }
  0x25   : > { %p1276_p10 = pnand %p856_p9, %p1375_p2  ;;  %s201_s8 = sshll.u32 %s193_s7, 4  ;;  %s202_s8 = int_to_ptr.vmem [resolvable:$true] %s201_s8 }
  0x26   : > { %p1025_p12 = scmp.ne.s32.totalorder %s155_s26, %s1024_s9  ;;  %p1032_p1 = scmp.lt.s32.totalorder %s155_s26, %s155_s26 }
  0x27   : > { %p1015_p11 = pneg %p1276_p10  ;;  %p1033_p3 = scmp.lt.s32.totalorder %s1024_s9, %s1024_s9 }
  0x29   : > { %p1027_p13 = pnand %p1025_p12, %p1015_p11  ;;  %p1034_p4 = por %p1033_p3, %p1032_p1 }
  0x2b   : > { %p1028_p0 = pneg %p1027_p13 }
  0x2d   : > { %p1035_p9 = pnand %p1034_p4, %p1028_p0 }
  0x2f   : > { %1038 = shalt.err (!%p1035_p9)
}
  0x30   : > { %s1156_s22 = smov 64   ;;  %s1157_s10 = smov 4  }
  0x31   : > { %859 = dma.hbm_to_vmem [thread:$0]  (!%p1276_p10), %s1371_s0, 128, %s155_s26, [#allocation6], %s1156_s22, %s1156_s22, %s1157_s10  }
  0x32   : > { %s1052_s25 = scalar_lea.vmem %s202_s8, 64  ;;  %s1158_s12 = smov [#allocation10]  }
  0x33   : > { %p1053_p2 = scmp.ne.s32.totalorder %s202_s8, %s1052_s25  ;;  %s1057_s27 = sshll.u32 %s1158_s12, 4  ;;  %s1058_s27 = int_to_ptr.vmem [resolvable:$false] %s1057_s27 }
  0x34   : > { %s1059_s30 = scalar_lea.vmem %s1058_s27, 128  ;;  %p1060_p13 = scmp.lt.s32.totalorder %s202_s8, %s1058_s27 }
  0x35   : > { %p1055_p11 = pnand %p1053_p2, %p987_p7  ;;  %p1061_p0 = scmp.lt.s32.totalorder %s1059_s30, %s1052_s25 }
  0x37   : > { %p1056_p12 = pneg %p1055_p11  ;;  %p1062_p1 = por %p1061_p0, %p1060_p13 }
  0x39   : > { %p1063_p3 = pnand %p1062_p1, %p1056_p12 }
  0x3b   : > { %1066 = shalt.err (!%p1063_p3)
}
  0x3c   : > { %866 = dma.hbm_to_vmem [thread:$0]  (!%p1237_p6), %s1283_s6, 64, %s202_s8, %s1241_s5  }
  0x3d   : > { %210 = sbr.rel (%p1265_p8) target bundleno = 914 (0x392), region = 32  ;;  %p1380_p7 = scmp.eq.s32.totalorder (!%p1265_p8), %s1252_s20, 0 }
  0x42   : > { %1116 = dma.done.wait (%p1380_p7), [#allocation6], 128   ;;  %p1381_p2 = pmov %p1380_p7 }
  0x43   : > { %s216_s26 = sand.u32 1, %s1252_s20   ;;  %s218_s28 = sand.u32 1, %s1133_s13  }
  0x44   : > { %1118 = vsyncadd (%p1381_p2), [#allocation6], 4294967168  ;;  %s812_s4 = sshll.u32 %s218_s28, 7  ;;  %s217_s7 = scalar_lea.sflag [#allocation9], %s216_s26 }
  0x45   : > { %s1307_s29 = scalar_lea.vmem [#allocation8], %s812_s4 }
  0x46   : > { %1120 = dma.done.wait (%p1261_p5), %s217_s7, 2112  }
  0x47   : > { %1122 = vsyncadd (%p1261_p5), %s217_s7, 4294965184  ;;  %s1313_s5 = sshll.u32 %s218_s28, 2  ;;  %p814_p6 = scmp.ne.s32.totalorder %s1141_s15, 0 }
  0x48   : > { %s229_s23 = scalar_lea.vmem [#allocation10], %s1313_s5 }
  0x49   : > { %260 = sbr.rel (%p814_p6) target bundleno = 81 (0x51), region = 48 }
  0x4e   : > { %vm261_vm0 = vcmask 7168   ;;  %v1159_v0 = vmov -inf   ;;  %v1160_v1 = vmov 0.0  }
  0x4f   : > { %262 = vst.msk [vmem:[#allocation3] sm:$0xff] %vm261_vm0, %v1159_v0  ;;  %263 = vst.msk [vmem:[#allocation3 + $0x8] sm:$0xff] %vm261_vm0, %v1159_v0 }
  0x50   : > { %264 = vst.msk [vmem:[#allocation4] sm:$0xff] %vm261_vm0, %v1160_v1  ;;  %265 = vst.msk [vmem:[#allocation4 + $0x8] sm:$0xff] %vm261_vm0, %v1160_v1 }
  0x51 PF: > { %v935_v2 = vld [vmem:[%s1307_s29 + $0x64] ss:$16 sps:$4 sm:$0xff]   ;;  %v937_v3 = vld [vmem:[%s1307_s29 + $0x6c] ss:$16 sps:$4 sm:$0xff]   ;;  %v1161_v4 = vmov 0   ;;  %vm391_vm1 = vcmask 523264   ;;  %v286_v20 = vlaneseq }
  0x52   : > { %427 = vmatprep.mubr.bf16.mxu0 %v1161_v4  ;;  %470 = vmatprep.mubr.bf16.mxu1 %v1161_v4  ;;  %v939_v5 = vld [vmem:[%s1307_s29 + $0x60] ss:$16 sps:$4 sm:$0xff]   ;;  %v940_v6 = vld [vmem:[%s1307_s29 + $0x68] ss:$16 sps:$4 sm:$0xff]   ;;  %v941_v7 = vld [vmem:[%s1307_s29 + $0x44] ss:$16 sps:$4 sm:$0xff]  }
  0x53   : > { %403 = vmatprep.subr.bf16.mxu0 %v935_v2  ;;  %933 = vset.pattern.permute.xlu1 %v1161_v4  ;;  %v943_v8 = vld [vmem:[%s1307_s29 + $0x4c] ss:$16 sps:$4 sm:$0xff]   ;;  %v945_v9 = vld [vmem:[%s1307_s29 + $0x40] ss:$16 sps:$4 sm:$0xff]   ;;  %v946_v10 = vld [vmem:[%s1307_s29 + $0x48] ss:$16 sps:$4 sm:$0xff]  }
  0x54   : > { %446 = vmatprep.subr.bf16.mxu1 %v937_v3  ;;  %934 = vset.pattern.permute.xlu0 %v1161_v4  ;;  %v947_v11 = vld [vmem:[%s1307_s29 + $0x24] ss:$16 sps:$4 sm:$0xff]   ;;  %v949_v12 = vld [vmem:[%s1307_s29 + $0x2c] ss:$16 sps:$4 sm:$0xff]   ;;  %v951_v13 = vld [vmem:[%s1307_s29 + $0x20] ss:$16 sps:$4 sm:$0xff]  }
  0x55   : > { %404 = vmatpush1.bf16.msra.mxu0 %v939_v5  ;;  %447 = vmatpush1.bf16.msra.mxu1 %v940_v6  ;;  %v952_v14 = vld [vmem:[%s1307_s29 + $0x28] ss:$16 sps:$4 sm:$0xff]   ;;  %v953_v15 = vld [vmem:[%s1307_s29 + $0x4] ss:$16 sps:$4 sm:$0xff]   ;;  %v955_v16 = vld [vmem:[%s1307_s29 + $0xc] ss:$16 sps:$4 sm:$0xff]  }
  0x56   : > { %405 = vmatprep.subr.bf16.mxu0 %v941_v7  ;;  %448 = vmatprep.subr.bf16.mxu1 %v943_v8  ;;  %v957_v17 = vld [vmem:[%s1307_s29] ss:$16 sps:$4 sm:$0xff]   ;;  %v958_v18 = vld [vmem:[%s1307_s29 + $0x8] ss:$16 sps:$4 sm:$0xff]   ;;  %v287_v21 = vshrl.u32 %v286_v20, 7  ;;  %s843_s21 = sshll.u32 %s1141_s15, 6 }
  0x57   : > { %v959_v19 = vld [vmem:[#allocation5] sm:$0xff]   ;;  %v284_v24 = vld [vmem:[%s229_s23] sm:$0xf]  ;;  %s483_s6 = scalar_lea.vmem [#allocation2], %s843_s21  ;;  %vm562_vm2 = vcmask 7168   ;;  %p836_p5 = scmp.ne.s32.totalorder %s1141_s15, 3 }
  0x58   : > { %v288_v22 = vsub.s32 0, %v287_v21  ;;  %v296_v23 = vsub.s32 2, %v287_v21  ;;  %v292_v25 = vsub.s32 1, %v287_v21  ;;  %v300_v26 = vsub.s32 3, %v287_v21  ;;  %v492_v53 = vld [vmem:[#allocation3] sm:$0xff]  ;;  %v493_v56 = vld [vmem:[#allocation3 + $0x8] sm:$0xff] }
  0x59   : > { %406 = vmatpush1.bf16.msra.mxu0 %v945_v9  ;;  %449 = vmatpush1.bf16.msra.mxu1 %v946_v10 }
  0x5a   : > { %407 = vmatprep.subr.bf16.mxu0 %v947_v11  ;;  %450 = vmatprep.subr.bf16.mxu1 %v949_v12  ;;  %v289_v27 = vrot.slane %v284_v24, %v288_v22  ;;  %v297_v28 = vrot.slane %v284_v24, %v296_v23  ;;  %v293_v29 = vrot.slane %v284_v24, %v292_v25 }
  0x5b   : > { %v301_v30 = vrot.slane %v284_v24, %v300_v26 }
  0x5d   : > { %408 = vmatpush1.bf16.msra.mxu0 %v951_v13  ;;  %451 = vmatpush1.bf16.msra.mxu1 %v952_v14 }
  0x5e   : > { %409 = vmatprep.subr.bf16.mxu0 %v953_v15  ;;  %452 = vmatprep.subr.bf16.mxu1 %v955_v16 }
  0x61   : > { %410 = vmatpush1.bf16.msra.mxu0 %v957_v17  ;;  %453 = vmatpush1.bf16.msra.mxu1 %v958_v18 }
  0x64   : > { %832 = vmatmul.mubr.msk.bf16.vlgmr.msra.gmra.mxu0 %vm391_vm1, %v959_v19  ;;  %833 = vmatmul.mubr.msk.bf16.vlgmr.msra.gmra.mxu1 %vm391_vm1, %v959_v19 }
 0x124   : > { %v429_v31 = vpop.f32.mrf.mxu0  ;;  %v472_v32 = vpop.f32.mrf.mxu1 }
 0x125   : > { %v430_v33 = vadd.f32 %v429_v31, %v289_v27  ;;  %v473_v34 = vadd.f32 %v472_v32, %v297_v28  ;;  %v506_v32 = vld [vmem:[#allocation4] sm:$0xff] }
 0x126   : > { %v431_v35 = vpop.f32.mrf.mxu0  ;;  %v474_v36 = vpop.f32.mrf.mxu1 }
 0x127   : > { %484 = vst [vmem:[%s483_s6] sm:$0xff] %v430_v33  ;;  %486 = vst [vmem:[%s483_s6 + $0x10] sm:$0xff] %v473_v34  ;;  %v432_v37 = vadd.f32 %v431_v35, %v293_v29  ;;  %v475_v38 = vadd.f32 %v474_v36, %v301_v30  ;;  %v494_v43 = vmax.f32 %v430_v33, %v473_v34  ;;  %v507_v36 = vld [vmem:[#allocation4 + $0x8] sm:$0xff] }
 0x128   : > { %v433_v39 = vpop.f32.mrf.mxu0  ;;  %v476_v40 = vpop.f32.mrf.mxu1 }
 0x129   : > { %485 = vst [vmem:[%s483_s6 + $0x8] sm:$0xff] %v432_v37  ;;  %487 = vst [vmem:[%s483_s6 + $0x18] sm:$0xff] %v475_v38  ;;  %v434_v41 = vadd.f32 %v433_v39, %v289_v27  ;;  %v477_v42 = vadd.f32 %v476_v40, %v297_v28  ;;  %v495_v44 = vmax.f32 %v432_v37, %v475_v38 }
 0x12a   : > { %v435_v45 = vpop.f32.mrf.mxu0  ;;  %v478_v46 = vpop.f32.mrf.mxu1 }
 0x12b   : > { %488 = vst [vmem:[%s483_s6 + $0x20] sm:$0xff] %v434_v41  ;;  %490 = vst [vmem:[%s483_s6 + $0x30] sm:$0xff] %v477_v42  ;;  %v436_v47 = vadd.f32 %v435_v45, %v293_v29  ;;  %v479_v48 = vadd.f32 %v478_v46, %v301_v30  ;;  %v496_v49 = vmax.f32 %v494_v43, %v495_v44 }
 0x12c   : > { %v499_v50 = vmax.f32 %v434_v41, %v477_v42 }
 0x12d   : > { %489 = vst [vmem:[%s483_s6 + $0x28] sm:$0xff] %v436_v47  ;;  %491 = vst [vmem:[%s483_s6 + $0x38] sm:$0xff] %v479_v48  ;;  %497 = vmax.xlane.f32.xlu0 %v496_v49  ;;  %v500_v51 = vmax.f32 %v436_v47, %v479_v48 }
 0x12f   : > { %v501_v52 = vmax.f32 %v499_v50, %v500_v51 }
 0x131   : > { %502 = vmax.xlane.f32.xlu0 %v501_v52 }
 0x1b6   : > { %v498_v54 = vpop.xlane.xlu0 %497 }
 0x1b7   : > { %v504_v55 = vmax.f32 %v492_v53, %v498_v54 }
 0x1b9   : > { %v508_v57 = vsub.f32 %v492_v53, %v504_v55  ;;  %565 = vst.msk [vmem:[#allocation3] sm:$0xff] %vm562_vm2, %v504_v55  ;;  %518 = vperm.xlu1 %933, %v504_v55  }
 0x1ba   : > { %v503_v58 = vpop.xlane.xlu0 %502 }
 0x1bb   : > { %v505_v59 = vmax.f32 %v493_v56, %v503_v58  ;;  %v510_v29 = vmul.f32 1.442695, %v508_v57 }
 0x1bd   : > { %v509_v60 = vsub.f32 %v493_v56, %v505_v59  ;;  %566 = vst.msk [vmem:[#allocation3 + $0x8] sm:$0xff] %vm562_vm2, %v505_v59  ;;  %523 = vperm.xlu1 %933, %v505_v59  }
 0x1bf   : > { %v512_v30 = vmul.f32 1.442695, %v509_v60 }
 0x234   : > { %v519_v61 = vpop.permute.xlu1 %518 }
 0x235   : > { %v526_v62 = vsub.f32 %v430_v33, %v519_v61  ;;  %v527_v63 = vsub.f32 %v432_v37, %v519_v61  ;;  %v528_v0 = vsub.f32 %v473_v34, %v519_v61  ;;  %v529_v1 = vsub.f32 %v475_v38, %v519_v61 }
 0x237   : > { %v534_v2 = vmul.f32 1.442695, %v526_v62  ;;  %v536_v3 = vmul.f32 1.442695, %v527_v63  ;;  %v538_v4 = vmul.f32 1.442695, %v528_v0 }
 0x238   : > { %v540_v5 = vmul.f32 1.442695, %v529_v1  ;;  %v524_v6 = vpop.permute.xlu1 %523 }
 0x239   : > { %960 = vpow2.f32 %v534_v2  ;;  %v530_v7 = vsub.f32 %v434_v41, %v524_v6  ;;  %v531_v8 = vsub.f32 %v436_v47, %v524_v6  ;;  %v532_v9 = vsub.f32 %v477_v42, %v524_v6 }
 0x23a   : > { %962 = vpow2.f32 %v536_v3  ;;  %v533_v10 = vsub.f32 %v479_v48, %v524_v6 }
 0x23b   : > { %964 = vpow2.f32 %v538_v4  ;;  %v542_v11 = vmul.f32 1.442695, %v530_v7  ;;  %v544_v12 = vmul.f32 1.442695, %v531_v8  ;;  %v546_v13 = vmul.f32 1.442695, %v532_v9 }
 0x23c   : > { %966 = vpow2.f32 %v540_v5  ;;  %v548_v14 = vmul.f32 1.442695, %v533_v10 }
 0x23d   : > { %968 = vpow2.f32 %v542_v11 }
 0x23e   : > { %970 = vpow2.f32 %v544_v12 }
 0x23f   : > { %972 = vpow2.f32 %v546_v13 }
 0x240   : > { %974 = vpow2.f32 %v548_v14 }
 0x241   : > { %976 = vpow2.f32 %v510_v29 }
 0x242   : > { %978 = vpow2.f32 %v512_v30 }
 0x246   : > { %v961_v15 = vpop.eup %960 }
 0x247   : > { %v963_v16 = vpop.eup %962 }
 0x248   : > { %v965_v17 = vpop.eup %964  ;;  %v550_v18 = vadd.f32 %v963_v16, %v961_v15 }
 0x249   : > { %v967_v19 = vpop.eup %966 }
 0x24a   : > { %v969_v20 = vpop.eup %968  ;;  %v551_v21 = vadd.f32 %v965_v17, %v550_v18 }
 0x24b   : > { %v971_v22 = vpop.eup %970 }
 0x24c   : > { %v552_v23 = vadd.f32 %v967_v19, %v551_v21  ;;  %v555_v24 = vadd.f32 %v971_v22, %v969_v20  ;;  %v973_v25 = vpop.eup %972 }
 0x24d   : > { %v975_v27 = vpop.eup %974 }
 0x24e   : > { %553 = vadd.xlane.f32.xlu0 %v552_v23  ;;  %v556_v26 = vadd.f32 %v973_v25, %v555_v24  ;;  %v977_v31 = vpop.eup %976 }
 0x24f   : > { %v514_v33 = vmul.f32 %v977_v31, %v506_v32  ;;  %v979_v34 = vpop.eup %978 }
 0x250   : > { %v557_v28 = vadd.f32 %v975_v27, %v556_v26  ;;  %v515_v38 = vmul.f32 %v979_v34, %v507_v36 }
 0x252   : > { %558 = vadd.xlane.f32.xlu1 %v557_v28 }
 0x2d7   : > { %v554_v35 = vpop.xlane.xlu0 %553 }
 0x2d8   : > { %v560_v37 = vadd.f32 %v554_v35, %v514_v33 }
 0x2da   : > { %563 = vst.msk [vmem:[#allocation4] sm:$0xff] %vm562_vm2, %v560_v37  ;;  %570 = sbr.rel (%p836_p5) target bundleno = 898 (0x382), region = 52 }
 0x2db   : > { %v559_v39 = vpop.xlane.xlu1 %558 }
 0x2dc   : > { %v561_v40 = vadd.f32 %v559_v39, %v515_v38 }
 0x2de   : > { %564 = vst.msk [vmem:[#allocation4 + $0x8] sm:$0xff] %vm562_vm2, %v561_v40 }
 0x2df   : > { %v1162_v42 = vmov 0   ;;  %v571_v45 = vld [vmem:[#allocation3] sm:$0xff]  ;;  %v572_v48 = vld [vmem:[#allocation3 + $0x8] sm:$0xff]  ;;  %v583_v54 = vld [vmem:[#allocation2 + $0x10] sm:$0xff] }
 0x2e0   : > { %980 = vset.pattern.permute.xlu0 %v1162_v42  ;;  %v581_v52 = vld [vmem:[#allocation2] sm:$0xff]  ;;  %v582_v53 = vld [vmem:[#allocation2 + $0x8] sm:$0xff]  ;;  %v584_v55 = vld [vmem:[#allocation2 + $0x18] sm:$0xff] }
 0x2e1   : > { %v573_v41 = vld [vmem:[#allocation4] sm:$0xff]  ;;  %v616_v56 = vld [vmem:[#allocation2 + $0x40] sm:$0xff]  ;;  %v617_v57 = vld [vmem:[#allocation2 + $0x48] sm:$0xff] }
 0x2e2   : > { %981 = vlog2.f32 %v573_v41  ;;  %v618_v58 = vld [vmem:[#allocation2 + $0x50] sm:$0xff]  ;;  %v619_v59 = vld [vmem:[#allocation2 + $0x58] sm:$0xff]  ;;  %v641_v60 = vld [vmem:[#allocation2 + $0x80] sm:$0xff] }
 0x2e3   : > { %v642_v61 = vld [vmem:[#allocation2 + $0x88] sm:$0xff]  ;;  %v643_v62 = vld [vmem:[#allocation2 + $0x90] sm:$0xff]  ;;  %v644_v63 = vld [vmem:[#allocation2 + $0x98] sm:$0xff] }
 0x2e4   : > { %v666_v0 = vld [vmem:[#allocation2 + $0xc0] sm:$0xff]  ;;  %v667_v1 = vld [vmem:[#allocation2 + $0xc8] sm:$0xff]  ;;  %v668_v2 = vld [vmem:[#allocation2 + $0xd0] sm:$0xff] }
 0x2e5   : > { %v574_v43 = vld [vmem:[#allocation4 + $0x8] sm:$0xff]  ;;  %v585_v5 = vld [vmem:[#allocation2 + $0x20] sm:$0xff]  ;;  %v586_v10 = vld [vmem:[#allocation2 + $0x28] sm:$0xff] }
 0x2e6   : > { %983 = vlog2.f32 %v574_v43  ;;  %v669_v3 = vld [vmem:[#allocation2 + $0xd8] sm:$0xff]  ;;  %v587_v11 = vld [vmem:[#allocation2 + $0x30] sm:$0xff]  ;;  %v620_v17 = vld [vmem:[#allocation2 + $0x60] sm:$0xff] }
 0x2e7   : > { %v588_v12 = vld [vmem:[#allocation2 + $0x38] sm:$0xff]  ;;  %v621_v18 = vld [vmem:[#allocation2 + $0x68] sm:$0xff]  ;;  %v622_v19 = vld [vmem:[#allocation2 + $0x70] sm:$0xff] }
 0x2e8   : > { %v623_v24 = vld [vmem:[#allocation2 + $0x78] sm:$0xff]  ;;  %v645_v25 = vld [vmem:[#allocation2 + $0xa0] sm:$0xff]  ;;  %v646_v26 = vld [vmem:[#allocation2 + $0xa8] sm:$0xff] }
 0x2e9   : > { %v647_v31 = vld [vmem:[#allocation2 + $0xb0] sm:$0xff]  ;;  %v648_v32 = vld [vmem:[#allocation2 + $0xb8] sm:$0xff]  ;;  %v670_v33 = vld [vmem:[#allocation2 + $0xe0] sm:$0xff] }
 0x2ea   : > { %v671_v35 = vld [vmem:[#allocation2 + $0xe8] sm:$0xff]  ;;  %v672_v36 = vld [vmem:[#allocation2 + $0xf0] sm:$0xff]  ;;  %v673_v37 = vld [vmem:[#allocation2 + $0xf8] sm:$0xff] }
 0x2ef   : > { %v982_v44 = vpop.eup %981 }
 0x2f0   : > { %v576_v47 = vmul.f32 0.6931472, %v982_v44 }
 0x2f2   : > { %v579_v50 = vadd.f32 %v576_v47, %v571_v45 }
 0x2f3   : > { %v984_v46 = vpop.eup %983 }
 0x2f4   : > { %v578_v49 = vmul.f32 0.6931472, %v984_v46  ;;  %591 = vperm.xlu0 %980, %v579_v50  }
 0x2f6   : > { %v580_v51 = vadd.f32 %v578_v49, %v572_v48 }
 0x2f8   : > { %596 = vperm.xlu0 %980, %v580_v51  }
 0x36f   : > { %v592_v4 = vpop.permute.xlu0 %591 }
 0x370   : > { %v599_v6 = vsub.f32 %v581_v52, %v592_v4  ;;  %v600_v7 = vsub.f32 %v582_v53, %v592_v4  ;;  %v601_v8 = vsub.f32 %v583_v54, %v592_v4  ;;  %v602_v9 = vsub.f32 %v584_v55, %v592_v4 }
 0x371   : > { %v624_v13 = vsub.f32 %v616_v56, %v592_v4  ;;  %v625_v14 = vsub.f32 %v617_v57, %v592_v4  ;;  %v626_v15 = vsub.f32 %v618_v58, %v592_v4  ;;  %v627_v16 = vsub.f32 %v619_v59, %v592_v4 }
 0x372   : > { %607 = vst [vmem:[#allocation11] sm:$0xff] %v599_v6  ;;  %608 = vst [vmem:[#allocation11 + $0x8] sm:$0xff] %v600_v7  ;;  %v649_v20 = vsub.f32 %v641_v60, %v592_v4  ;;  %v650_v21 = vsub.f32 %v642_v61, %v592_v4  ;;  %v651_v22 = vsub.f32 %v643_v62, %v592_v4 }
 0x373   : > { %609 = vst [vmem:[#allocation11 + $0x10] sm:$0xff] %v601_v8  ;;  %610 = vst [vmem:[#allocation11 + $0x18] sm:$0xff] %v602_v9  ;;  %v652_v23 = vsub.f32 %v644_v63, %v592_v4  ;;  %v674_v27 = vsub.f32 %v666_v0, %v592_v4  ;;  %v675_v28 = vsub.f32 %v667_v1, %v592_v4  ;;  %v597_v34 = vpop.permute.xlu0 %596 }
 0x374   : > { %632 = vst [vmem:[#allocation11 + $0x20] sm:$0xff] %v624_v13  ;;  %633 = vst [vmem:[#allocation11 + $0x28] sm:$0xff] %v625_v14  ;;  %v676_v29 = vsub.f32 %v668_v2, %v592_v4  ;;  %v677_v30 = vsub.f32 %v669_v3, %v592_v4  ;;  %v603_v38 = vsub.f32 %v585_v5, %v597_v34 }
 0x375   : > { %634 = vst [vmem:[#allocation11 + $0x30] sm:$0xff] %v626_v15  ;;  %635 = vst [vmem:[#allocation11 + $0x38] sm:$0xff] %v627_v16  ;;  %v604_v39 = vsub.f32 %v586_v10, %v597_v34  ;;  %v605_v40 = vsub.f32 %v587_v11, %v597_v34  ;;  %v606_v41 = vsub.f32 %v588_v12, %v597_v34 }
 0x376   : > { %657 = vst [vmem:[#allocation11 + $0x40] sm:$0xff] %v649_v20  ;;  %658 = vst [vmem:[#allocation11 + $0x48] sm:$0xff] %v650_v21  ;;  %v628_v42 = vsub.f32 %v620_v17, %v597_v34  ;;  %v629_v43 = vsub.f32 %v621_v18, %v597_v34  ;;  %v630_v44 = vsub.f32 %v622_v19, %v597_v34 }
 0x377   : > { %659 = vst [vmem:[#allocation11 + $0x50] sm:$0xff] %v651_v22  ;;  %660 = vst [vmem:[#allocation11 + $0x58] sm:$0xff] %v652_v23  ;;  %v631_v45 = vsub.f32 %v623_v24, %v597_v34  ;;  %v653_v46 = vsub.f32 %v645_v25, %v597_v34  ;;  %v654_v47 = vsub.f32 %v646_v26, %v597_v34 }
 0x378   : > { %682 = vst [vmem:[#allocation11 + $0x60] sm:$0xff] %v674_v27  ;;  %683 = vst [vmem:[#allocation11 + $0x68] sm:$0xff] %v675_v28  ;;  %v655_v48 = vsub.f32 %v647_v31, %v597_v34  ;;  %v656_v49 = vsub.f32 %v648_v32, %v597_v34  ;;  %v678_v50 = vsub.f32 %v670_v33, %v597_v34 }
 0x379   : > { %684 = vst [vmem:[#allocation11 + $0x70] sm:$0xff] %v676_v29  ;;  %685 = vst [vmem:[#allocation11 + $0x78] sm:$0xff] %v677_v30  ;;  %v679_v51 = vsub.f32 %v671_v35, %v597_v34  ;;  %v680_v52 = vsub.f32 %v672_v36, %v597_v34  ;;  %v681_v53 = vsub.f32 %v673_v37, %v597_v34 }
 0x37a   : > { %611 = vst [vmem:[#allocation11 + $0x80] sm:$0xff] %v603_v38  ;;  %612 = vst [vmem:[#allocation11 + $0x88] sm:$0xff] %v604_v39 }
 0x37b   : > { %613 = vst [vmem:[#allocation11 + $0x90] sm:$0xff] %v605_v40  ;;  %614 = vst [vmem:[#allocation11 + $0x98] sm:$0xff] %v606_v41 }
 0x37c   : > { %636 = vst [vmem:[#allocation11 + $0xa0] sm:$0xff] %v628_v42  ;;  %637 = vst [vmem:[#allocation11 + $0xa8] sm:$0xff] %v629_v43 }
 0x37d   : > { %638 = vst [vmem:[#allocation11 + $0xb0] sm:$0xff] %v630_v44  ;;  %639 = vst [vmem:[#allocation11 + $0xb8] sm:$0xff] %v631_v45 }
 0x37e   : > { %661 = vst [vmem:[#allocation11 + $0xc0] sm:$0xff] %v653_v46  ;;  %662 = vst [vmem:[#allocation11 + $0xc8] sm:$0xff] %v654_v47 }
 0x37f   : > { %663 = vst [vmem:[#allocation11 + $0xd0] sm:$0xff] %v655_v48  ;;  %664 = vst [vmem:[#allocation11 + $0xd8] sm:$0xff] %v656_v49 }
 0x380   : > { %686 = vst [vmem:[#allocation11 + $0xe0] sm:$0xff] %v678_v50  ;;  %687 = vst [vmem:[#allocation11 + $0xe8] sm:$0xff] %v679_v51 }
 0x381   : > { %688 = vst [vmem:[#allocation11 + $0xf0] sm:$0xff] %v680_v52  ;;  %689 = vst [vmem:[#allocation11 + $0xf8] sm:$0xff] %v681_v53 }
 0x382 PF: > { %p870_p8 = scmp.eq.s32.totalorder %s1252_s20, 3  ;;  %s1163_s15 = smov [#allocation11]  }
 0x383   : > { %s700_s8 = sshll.u32 %s1163_s15, 4  ;;  %s701_s8 = int_to_ptr.vmem [resolvable:$true] %s700_s8 }
 0x384   : > { %s1067_s9 = scalar_lea.vmem %s701_s8, 4096  ;;  %p1074_p11 = scmp.lt.s32.totalorder %s701_s8, %s701_s8 }
 0x385   : > { %p1068_p10 = scmp.ne.s32.totalorder %s701_s8, %s1067_s9  ;;  %p1075_p12 = scmp.lt.s32.totalorder %s1067_s9, %s1067_s9 }
 0x387   : > { %p1069_p4 = pnand %p1068_p10, %p870_p8  ;;  %p1076_p13 = por %p1075_p12, %p1074_p11 }
 0x389   : > { %p1070_p9 = pneg %p1069_p4 }
 0x38b   : > { %p1077_p0 = pnand %p1076_p13, %p1070_p9 }
 0x38d   : > { %1080 = shalt.err (!%p1077_p0)
}
 0x38e   : > { %s1164_s22 = smov 2048   ;;  %s1165_s10 = smov 128  }
 0x38f   : > { %853 = dma.vmem_to_hbm [thread:$0]  (%p870_p8), %s701_s8, 4096, %s1374_s3, [#allocation7], %s1164_s22, %s1164_s22, %s1165_s10  }
 0x390   : > { %1124 = dma.done.wait (%p870_p8), [#allocation7], 4096  }
 0x391   : > { %1126 = vsyncadd (%p870_p8), [#allocation7], 4294963200 }
 0x392 PF: > { %s18_s17 = sadd.s32 1, %s1149_s17   ;;  %s1382_s12 = smov %s1133_s13 }
 0x393   : > { %p15_p1 = scmp.ge.s32.totalorder %s18_s17, 6   ;;  %s1383_s13 = smov %s1137_s14 }
 0x394   : > { %s1384_s14 = smov %s1230_s24  ;;  %s1385_s15 = smov %s1145_s16 }
 0x395   : > { %s1386_s16 = smov %s1388_s18  ;;  %17 = sbr.rel (!%p15_p1) target bundleno = 6 (0x6), region = 99 }
 0x39a   :  { %716 = vsyncpa [#allocation6], 1 }
 0x39b   :  { %718 = vsyncpa [#allocation6 + $0x1], 1 }
 0x39c   :  { %719 = vsyncpa [#allocation9], 1 }
 0x39d   :  { %721 = vsyncpa [#allocation9 + $0x1], 1 }
 0x39e   :  { %722 = vsyncpa [#allocation7], 1 }
 0x39f   :  { %724 = vsyncpa [#allocation7 + $0x1], 1 }

</bundles_post_ra>
